<compile_context>
chip_gen: v5e
topology: v5e:2x2
jax: 0.10.0
libtpu: 0.0.40
codegen_flags: <defaults>
</compile_context>

<pallas_src>
import functools

import jax
import jax.numpy as jnp
from jax.experimental import pallas as pl
from jax.experimental.pallas import tpu as pltpu

_LANE = 128


def _layernorm_kernel(x_ref, w_ref, b_ref, o_ref, *, eps, inv_h):
    """Standard path: one read pass + one write pass over (tile_rows, H)."""
    xf = x_ref[...].astype(jnp.float32)                    # (tr, H)
    # Single sweep: sum(x) and sum(x*x) are independent reductions (good ILP).
    # NOTE: E[x^2]-E[x]^2 can cancel if |mean| >> std; f32 accumulation keeps
    # the error well below the 1e-5 tolerance for typical activation stats.
    sx = jnp.sum(xf, axis=-1, keepdims=True)
    sq = jnp.sum(xf * xf, axis=-1, keepdims=True)
    u = sx * inv_h                                         # mean
    s = jnp.maximum(sq * inv_h - u * u, 0.0)               # biased variance
    r = jax.lax.rsqrt(s + eps)                             # eps inside sqrt
    w = w_ref[...].astype(jnp.float32)                     # (1, H)
    b = b_ref[...].astype(jnp.float32)                     # (1, H)
    # Rows of a partial last block are undefined (masked on store); the
    # max(.,0)+eps clamp keeps rsqrt finite there.
    o_ref[...] = ((xf - u) * r * w + b).astype(o_ref.dtype)


def _layernorm_packed_kernel(x_ref, w_ref, b_ref, seg_ref, o_ref, *, eps, inv_h):
    """Lane-dense path: k rows folded into the lane axis (row width k*H = 128).

    Segmented per-row sums use the idle MXU via a block-diagonal ones matrix,
    so all VPU ops and stores stay fully lane-dense (no masked vst)."""
    xf = x_ref[...].astype(jnp.float32)                    # (tr, k*H)
    seg = seg_ref[...]                                     # (k*H, k*H) block-diag ones
    dot = functools.partial(jnp.dot, preferred_element_type=jnp.float32,
                            precision=jax.lax.Precision.HIGHEST)
    u = dot(xf, seg) * inv_h                               # per-segment mean (broadcast in-segment)
    q = dot(xf * xf, seg) * inv_h                          # per-segment E[x^2]
    s = jnp.maximum(q - u * u, 0.0)
    r = jax.lax.rsqrt(s + eps)
    w = w_ref[...].astype(jnp.float32)                     # (1, k*H) = weight tiled k times
    b = b_ref[...].astype(jnp.float32)
    o_ref[...] = ((xf - u) * r * w + b).astype(o_ref.dtype)


def _round_up(x, m):
    return ((x + m - 1) // m) * m


def _choose_tile_rows(rows, row_width, itemsize, sublane,
                      target_block_bytes=2 * 1024 * 1024):
    """Largest sublane-aligned row tile targeting ~2 MiB per block.

    No minimum-step cap (v5e/v6e are single-TC, extra steps are pure
    per-step overhead). When >= 2 tiles, prefer an even tile count so the
    two v7x TensorCores are balanced (one extra step costs ~0.35 us on
    1-TC chips — negligible)."""
    if rows * row_width * itemsize <= target_block_bytes:
        return rows                       # one block == full array (no masking)
    tr = (target_block_bytes // max(1, row_width * itemsize)) // sublane * sublane
    tr = max(sublane, tr)
    rows_aligned = _round_up(rows, sublane)
    tr = min(tr, rows_aligned)
    n = pl.cdiv(rows, tr)
    if n > 1 and n % 2 == 1:
        tr_even = _round_up(pl.cdiv(rows_aligned, n + 1), sublane)
        tr = max(sublane, min(tr, tr_even))
    return tr


def _vmem_limit_bytes():
    # Per-generation VMEM budget: half of physical, capped at 64 MiB
    # (v5e/v6e: 128 MiB physical -> 64 MiB; v7x: 64 MiB physical -> 32 MiB).
    try:
        cap = getattr(pltpu.get_tpu_info(), "vmem_capacity_bytes", None)
        if cap:
            return int(min(cap // 2, 64 * 1024 * 1024))
    except Exception:
        pass
    return 32 * 1024 * 1024


def layer_norm(x, weight, bias, eps=1e-12):
    """x: (..., hidden); weight, bias: (hidden,). Returns same shape/dtype as x."""
    orig_shape = x.shape
    hidden = orig_shape[-1]
    rows = 1
    for d in orig_shape[:-1]:
        rows *= d

    itemsize = jnp.dtype(x.dtype).itemsize
    sublane = max(8, 32 // itemsize)       # 8 for f32, 16 for bf16, 32 for 8-bit
    inv_h = 1.0 / hidden
    compiler_params = pltpu.CompilerParams(
        dimension_semantics=("parallel",),
        vmem_limit_bytes=_vmem_limit_bytes(),
    )

    # Lane-dense packing for small hidden: fold k = 128 // hidden rows into the
    # lane axis so every store is a full-lane (unmasked) vst.
    pack = (hidden < _LANE) and (_LANE % hidden == 0) and (rows % (_LANE // hidden) == 0)
    if pack:
        k = _LANE // hidden
        kh = k * hidden                    # == 128
        prow = rows // k
        x2 = x.reshape(prow, kh)
        w2 = jnp.tile(weight.reshape(-1), k).reshape(1, kh)
        b2 = jnp.tile(bias.reshape(-1), k).reshape(1, kh)
        seg = jnp.kron(jnp.eye(k, dtype=jnp.float32),
                       jnp.ones((hidden, hidden), jnp.float32))   # (128, 128)
        tr = _choose_tile_rows(prow, kh, itemsize, sublane)
        kernel = functools.partial(_layernorm_packed_kernel,
                                   eps=float(eps), inv_h=inv_h)
        out = pl.pallas_call(
            kernel,
            out_shape=jax.ShapeDtypeStruct((prow, kh), x.dtype),
            grid_spec=pltpu.PrefetchScalarGridSpec(
                num_scalar_prefetch=0,
                grid=(pl.cdiv(prow, tr),),
                in_specs=[
                    pl.BlockSpec((tr, kh), lambda i: (i, 0)),
                    pl.BlockSpec((1, kh), lambda i: (0, 0)),
                    pl.BlockSpec((1, kh), lambda i: (0, 0)),
                    pl.BlockSpec((kh, kh), lambda i: (0, 0)),
                ],
                out_specs=pl.BlockSpec((tr, kh), lambda i: (i, 0)),
            ),
            compiler_params=compiler_params,
        )(x2, w2, b2, seg)
        return out.reshape(orig_shape)

    # Standard path: the whole hidden axis lives inside one block; rows tiled.
    # TODO(synk): hidden that is neither a multiple of 128 nor a divisor of 128
    # (or rows not divisible by the packing factor) falls through here with
    # partially-masked lanes — correct, perf-only limitation.
    x2 = x.reshape(rows, hidden)
    w2 = weight.reshape(1, hidden)
    b2 = bias.reshape(1, hidden)
    tr = _choose_tile_rows(rows, hidden, itemsize, sublane)
    kernel = functools.partial(_layernorm_kernel, eps=float(eps), inv_h=inv_h)
    out = pl.pallas_call(
        kernel,
        out_shape=jax.ShapeDtypeStruct((rows, hidden), x.dtype),
        grid_spec=pltpu.PrefetchScalarGridSpec(
            num_scalar_prefetch=0,
            grid=(pl.cdiv(rows, tr),),
            in_specs=[
                pl.BlockSpec((tr, hidden), lambda i: (i, 0)),
                pl.BlockSpec((1, hidden), lambda i: (0, 0)),
                pl.BlockSpec((1, hidden), lambda i: (0, 0)),
            ],
            out_specs=pl.BlockSpec((tr, hidden), lambda i: (i, 0)),
        ),
        compiler_params=compiler_params,
    )(x2, w2, b2)
    return out.reshape(orig_shape)


if __name__ == "__main__":
    key = jax.random.PRNGKey(0)

    def ref_ln(x, w, b, eps):
        u = jnp.mean(x, axis=-1, keepdims=True)
        s = jnp.mean((x - u) ** 2, axis=-1, keepdims=True)
        return w * ((x - u) / jnp.sqrt(s + eps)) + b

    # Primary case (module usage): batch=2, seq=8, hidden=32 -> lane-dense packed path.
    batch, seq, hidden = 2, 8, 32
    kx, kw, kb, kx2 = jax.random.split(key, 4)
    x = jax.random.normal(kx, (batch, seq, hidden), dtype=jnp.float32)
    # Module init: weight = ones, bias = zeros. Perturb so the affine is exercised.
    weight = jnp.ones((hidden,), jnp.float32) + 0.1 * jax.random.normal(kw, (hidden,))
    bias = jnp.zeros((hidden,), jnp.float32) + 0.1 * jax.random.normal(kb, (hidden,))
    out = jax.block_until_ready(layer_norm(x, weight, bias, eps=1e-12))
    assert jnp.allclose(out, ref_ln(x, weight, bias, 1e-12), atol=1e-5, rtol=1e-5), \
        "mismatch vs reference (packed path)"

    # Secondary check exercising the standard (hidden % 128 == 0) path.
    hidden2 = 256
    x2 = jax.random.normal(kx2, (batch, seq, hidden2), dtype=jnp.float32)
    w2 = jnp.ones((hidden2,), jnp.float32)
    b2 = jnp.zeros((hidden2,), jnp.float32)
    out2 = jax.block_until_ready(layer_norm(x2, w2, b2, eps=1e-12))
    assert jnp.allclose(out2, ref_ln(x2, w2, b2, 1e-12), atol=1e-5, rtol=1e-5), \
        "mismatch vs reference (standard path)"

    print("KERNEL_OK")
</pallas_src>

<mosaic_0001>
module attributes {stable_mosaic.version = 11 : i64} {
  func.func @_layernorm_packed_kernel(%arg0: i32, %arg1: memref<4x128xf32, #tpu.memory_space<vmem>>, %arg2: memref<1x128xf32, #tpu.memory_space<vmem>>, %arg3: memref<1x128xf32, #tpu.memory_space<vmem>>, %arg4: memref<128x128xf32, #tpu.memory_space<vmem>>, %arg5: memref<4x128xf32, #tpu.memory_space<vmem>>) attributes {dimension_semantics = [#tpu.dimension_semantics<parallel>], iteration_bounds = array<i64: 1>, scalar_prefetch = 0 : i64, scratch_operands = 0 : i64, tpu.core_type = #tpu.core_type<tc>, window_params = [{transform_indices = @transform_0, window_bounds = array<i64: 4, 128>}, {pipeline_mode = #tpu.pipeline_mode<synchronous>, transform_indices = @transform_1, window_bounds = array<i64: 1, 128>}, {pipeline_mode = #tpu.pipeline_mode<synchronous>, transform_indices = @transform_2, window_bounds = array<i64: 1, 128>}, {pipeline_mode = #tpu.pipeline_mode<synchronous>, transform_indices = @transform_3, window_bounds = array<i64: 128, 128>}, {transform_indices = @transform_4, window_bounds = array<i64: 4, 128>}]} {
    %c0 = arith.constant 0 : index
    %c0_0 = arith.constant 0 : index
    %0 = vector.load %arg1[%c0, %c0_0] : memref<4x128xf32, #tpu.memory_space<vmem>>, vector<4x128xf32>
    %c0_1 = arith.constant 0 : index
    %c0_2 = arith.constant 0 : index
    %1 = vector.load %arg4[%c0_1, %c0_2] : memref<128x128xf32, #tpu.memory_space<vmem>>, vector<128x128xf32>
    %cst = arith.constant dense<0.000000e+00> : vector<4x128xf32>
    %2 = tpu.matmul %0, %1, %cst {dimension_numbers = #tpu.dot_dimension_numbers<[1], [0], [0], [1], [0, 0, 1, 1], [], []>, precision = #tpu.contract_precision<fp32>} : vector<4x128xf32>, vector<128x128xf32>, vector<4x128xf32> -> vector<4x128xf32>
    %cst_3 = arith.constant 3.125000e-02 : f32
    %3 = vector.broadcast %cst_3 : f32 to vector<4x128xf32>
    %4 = arith.mulf %2, %3 : vector<4x128xf32>
    %5 = arith.mulf %0, %0 : vector<4x128xf32>
    %cst_4 = arith.constant dense<0.000000e+00> : vector<4x128xf32>
    %6 = tpu.matmul %5, %1, %cst_4 {dimension_numbers = #tpu.dot_dimension_numbers<[1], [0], [0], [1], [0, 0, 1, 1], [], []>, precision = #tpu.contract_precision<fp32>} : vector<4x128xf32>, vector<128x128xf32>, vector<4x128xf32> -> vector<4x128xf32>
    %cst_5 = arith.constant 3.125000e-02 : f32
    %7 = vector.broadcast %cst_5 : f32 to vector<4x128xf32>
    %8 = arith.mulf %6, %7 : vector<4x128xf32>
    %9 = arith.mulf %4, %4 : vector<4x128xf32>
    %10 = arith.subf %8, %9 : vector<4x128xf32>
    %cst_6 = arith.constant 0.000000e+00 : f32
    %11 = vector.broadcast %cst_6 : f32 to vector<4x128xf32>
    %12 = arith.maximumf %10, %11 : vector<4x128xf32>
    %cst_7 = arith.constant 9.99999996E-13 : f32
    %13 = vector.broadcast %cst_7 : f32 to vector<4x128xf32>
    %14 = arith.addf %12, %13 : vector<4x128xf32>
    %15 = math.rsqrt %14 : vector<4x128xf32>
    %c0_8 = arith.constant 0 : index
    %c0_9 = arith.constant 0 : index
    %16 = vector.load %arg2[%c0_8, %c0_9] : memref<1x128xf32, #tpu.memory_space<vmem>>, vector<1x128xf32>
    %c0_10 = arith.constant 0 : index
    %c0_11 = arith.constant 0 : index
    %17 = vector.load %arg3[%c0_10, %c0_11] : memref<1x128xf32, #tpu.memory_space<vmem>>, vector<1x128xf32>
    %18 = arith.subf %0, %4 : vector<4x128xf32>
    %19 = arith.mulf %18, %15 : vector<4x128xf32>
    %20 = vector.broadcast %16 : vector<1x128xf32> to vector<4x128xf32>
    %21 = arith.mulf %19, %20 : vector<4x128xf32>
    %22 = vector.broadcast %17 : vector<1x128xf32> to vector<4x128xf32>
    %23 = arith.addf %21, %22 : vector<4x128xf32>
    %c0_12 = arith.constant 0 : index
    %c0_13 = arith.constant 0 : index
    %24 = vector.load %arg5[%c0_12, %c0_13] : memref<4x128xf32, #tpu.memory_space<vmem>>, vector<4x128xf32>
    tpu.vector_store %arg5[%c0_12, %c0_13], %23 {strides = array<i32>} : memref<4x128xf32, #tpu.memory_space<vmem>>, vector<4x128xf32>,
    return
  }
  func.func @transform_0(%arg0: i32) -> (i32, i32) {
    %c0_i32 = arith.constant 0 : i32
    %c0_i32_0 = arith.constant 0 : i32
    return %arg0, %c0_i32 : i32, i32
  }
  func.func @transform_1(%arg0: i32) -> (i32, i32) {
    %c0_i32 = arith.constant 0 : i32
    %c0_i32_0 = arith.constant 0 : i32
    %c0_i32_1 = arith.constant 0 : i32
    return %c0_i32, %c0_i32_0 : i32, i32
  }
  func.func @transform_2(%arg0: i32) -> (i32, i32) {
    %c0_i32 = arith.constant 0 : i32
    %c0_i32_0 = arith.constant 0 : i32
    %c0_i32_1 = arith.constant 0 : i32
    return %c0_i32, %c0_i32_0 : i32, i32
  }
  func.func @transform_3(%arg0: i32) -> (i32, i32) {
    %c0_i32 = arith.constant 0 : i32
    %c0_i32_0 = arith.constant 0 : i32
    %c0_i32_1 = arith.constant 0 : i32
    return %c0_i32, %c0_i32_0 : i32, i32
  }
  func.func @transform_4(%arg0: i32) -> (i32, i32) {
    %c0_i32 = arith.constant 0 : i32
    %c0_i32_0 = arith.constant 0 : i32
    return %arg0, %c0_i32 : i32, i32
  }
}

</mosaic_0001>

<bundles_post_ra>
// kernel: tpu_custom_call.1
= control target key start
LH: loop header
LB: loop body
LE: loop exit
PB: predicated region body
PF: predicated region fallthrough
CT: control target
= control target key end

     0   :  { %9 = vsyncpa [#allocation3], 0  ;;  %s1369_s0 = inlined_call_operand.hbm [shape: f32[4,128], index: 0, kind: input, shape index: {}]   ;;  %s1370_s1 = inlined_call_operand.hbm [shape: f32[1,128], index: 1, kind: input, shape index: {}]   ;;  %s1371_s2 = inlined_call_operand.vmem [shape: f32[1,128], index: 2, kind: input, shape index: {}]   ;;  %s1372_s3 = inlined_call_operand.hbm [shape: f32[128,128], index: 3, kind: input, shape index: {}]   ;;  %s1373_s4 = inlined_call_operand.hbm [shape: f32[4,128], index: 4, kind: output, shape index: {}]  }
   0x1   :  { %10 = vsyncpa [#allocation6], 0  ;;  %s28_s17 = sshll.u32 %s1370_s1, 4  ;;  %s29_s17 = int_to_ptr.hbm [resolvable:$true] %s28_s17 }
   0x2   :  { %11 = vsyncpa [#allocation4], 0  ;;  %s920_s18 = smov [#allocation5]   ;;  %s17_s22 = sshll.u32 %s1369_s0, 4  ;;  %s18_s22 = int_to_ptr.hbm [resolvable:$true] %s17_s22 }
   0x3   :  { %s30_s19 = sshll.u32 %s920_s18, 4  ;;  %s921_s23 = smov [#allocation2]   ;;  %s31_s19 = int_to_ptr.vmem [resolvable:$true] %s30_s19 }
   0x4   :  { %33 = dma.hbm_to_vmem [thread:$0]  %s29_s17, 16, %s31_s19, [#allocation6]  }
   0x5   :  { %s19_s24 = sshll.u32 %s921_s23, 4  ;;  %s40_s27 = sshll.u32 %s1372_s3, 4  ;;  %s20_s24 = int_to_ptr.vmem [resolvable:$true] %s19_s24  ;;  %s41_s27 = int_to_ptr.hbm [resolvable:$true] %s40_s27 }
   0x6   :  { %22 = dma.hbm_to_vmem [thread:$0]  %s18_s22, 64, %s20_s24, [#allocation3]  }
   0x7   :  { %s922_s1 = smov [#allocation7]   ;;  %s923_s29 = smov 128  }
   0x8   :  { %s42_s28 = sshll.u32 %s922_s1, 4  ;;  %s924_s30 = smov 8   ;;  %s43_s28 = int_to_ptr.vmem [resolvable:$true] %s42_s28 }
   0x9   :  { %48 = dma.hbm_to_vmem [thread:$0]  %s41_s27, 2048, %s43_s28, [#allocation6], %s923_s29, %s923_s29, %s924_s30  }
   0xa   :  { %914 = dma.done.wait [#allocation3], 64  }
   0xb   :  { %915 = vsyncadd [#allocation3], 4294967232 }
   0xc   :  { %916 = dma.done.wait [#allocation6], 2064  }
   0xd   :  { %917 = vsyncadd [#allocation6], 4294965232  ;;  %v77_v0 = vld [vmem:[#allocation7 + $0x78] sm:$0xff]  ;;  %v76_v1 = vld [vmem:[#allocation7 + $0x70] sm:$0xff]  ;;  %s925_s5 = smov [#allocation8]   ;;  %s797_s9 = sshll.u32 %s1373_s4, 4  ;;  %s798_s9 = int_to_ptr.hbm [resolvable:$true] %s797_s9 }
   0xe   :  { %v75_v2 = vld [vmem:[#allocation7 + $0x68] sm:$0xff]  ;;  %v960_v3 = vand.u32 4294901760, %v77_v0  ;;  %v962_v4 = vand.u32 4294901760, %v76_v1  ;;  %v74_v6 = vld [vmem:[#allocation7 + $0x60] sm:$0xff]  ;;  %v73_v7 = vld [vmem:[#allocation7 + $0x58] sm:$0xff]  ;;  %s795_s6 = sshll.u32 %s925_s5, 4  ;;  %s796_s6 = int_to_ptr.vmem [resolvable:$true] %s795_s6 }
   0xf   :  { %v964_v5 = vand.u32 4294901760, %v75_v2  ;;  %v72_v8 = vld [vmem:[#allocation7 + $0x50] sm:$0xff]  ;;  %v966_v9 = vand.u32 4294901760, %v74_v6  ;;  %v968_v10 = vand.u32 4294901760, %v73_v7  ;;  %v71_v12 = vld [vmem:[#allocation7 + $0x48] sm:$0xff]  ;;  %v70_v13 = vld [vmem:[#allocation7 + $0x40] sm:$0xff] }
  0x10   :  { %v970_v11 = vand.u32 4294901760, %v72_v8  ;;  %79 = vmatpush.msra.mxu0 %v960_v3  ;;  %v974_v14 = vsub.f32 %v77_v0, %v960_v3  ;;  %v977_v15 = vsub.f32 %v76_v1, %v962_v4  ;;  %275 = vmatpush.msra.mxu3 %v960_v3  ;;  %v983_v17 = vand.u32 4294901760, %v71_v12  ;;  %v69_v21 = vld [vmem:[#allocation7 + $0x38] sm:$0xff]  ;;  %v68_v34 = vld [vmem:[#allocation7 + $0x30] sm:$0xff]  ;;  %v67_v35 = vld [vmem:[#allocation7 + $0x28] sm:$0xff] }
  0x11   :  { %v981_v16 = vsub.f32 %v75_v2, %v964_v5  ;;  %v986_v18 = vsub.f32 %v74_v6, %v966_v9  ;;  %v989_v19 = vsub.f32 %v73_v7, %v968_v10  ;;  %v1005_v25 = vand.u32 4294901760, %v70_v13  ;;  %v66_v42 = vld [vmem:[#allocation7 + $0x20] sm:$0xff]  ;;  %v65_v48 = vld [vmem:[#allocation7 + $0x18] sm:$0xff]  ;;  %v64_v54 = vld [vmem:[#allocation7 + $0x10] sm:$0xff] }
  0x12   :  { %v992_v20 = vsub.f32 %v72_v8, %v970_v11  ;;  %222 = vmatpush.msra.mxu2 %v974_v14  ;;  %81 = vmatpush.msra.mxu0 %v962_v4  ;;  %v997_v22 = vand.u32 4294901760, %v974_v14  ;;  %v1000_v23 = vand.u32 4294901760, %v977_v15  ;;  %v1015_v28 = vsub.f32 %v71_v12, %v983_v17  ;;  %v63_v60 = vld [vmem:[#allocation7 + $0x8] sm:$0xff]  ;;  %v62_v1 = vld [vmem:[#allocation7] sm:$0xff] }
  0x13   :  { %v1003_v24 = vand.u32 4294901760, %v981_v16  ;;  %277 = vmatpush.msra.mxu3 %v962_v4  ;;  %v1009_v26 = vand.u32 4294901760, %v986_v18  ;;  %v1012_v27 = vand.u32 4294901760, %v989_v19  ;;  %v1025_v32 = vand.u32 4294901760, %v69_v21 }
  0x14   :  { %225 = vmatpush.msra.mxu2 %v977_v15  ;;  %83 = vmatpush.msra.mxu0 %v964_v5  ;;  %v122_v29 = vsub.f32 %v974_v14, %v997_v22  ;;  %v128_v30 = vsub.f32 %v977_v15, %v1000_v23  ;;  %v1029_v33 = vand.u32 4294901760, %v992_v20  ;;  %v1040_v39 = vsub.f32 %v70_v13, %v1005_v25 }
  0x15   :  { %v134_v31 = vsub.f32 %v981_v16, %v1003_v24  ;;  %279 = vmatpush.msra.mxu3 %v964_v5  ;;  %v140_v38 = vsub.f32 %v986_v18, %v1009_v26  ;;  %v146_v40 = vsub.f32 %v989_v19, %v1012_v27  ;;  %v1046_v41 = vand.u32 4294901760, %v1015_v28 }
  0x16   :  { %v1031_v36 = vand.u32 4294901760, %v122_v29  ;;  %228 = vmatpush.msra.mxu2 %v981_v16  ;;  %85 = vmatpush.msra.mxu0 %v966_v9  ;;  %v1035_v37 = vand.u32 4294901760, %v128_v30  ;;  %v1053_v44 = vsub.f32 %v69_v21, %v1025_v32  ;;  %v1055_v45 = vand.u32 4294901760, %v68_v34 }
  0x17   :  { %281 = vmatpush.msra.mxu3 %v966_v9  ;;  %v1050_v43 = vand.u32 4294901760, %v134_v31  ;;  %v1057_v46 = vand.u32 4294901760, %v67_v35  ;;  %v152_v47 = vsub.f32 %v992_v20, %v1029_v33  ;;  %v1065_v49 = vand.u32 4294901760, %v140_v38 }
  0x18   :  { %124 = vmatpush.msra.mxu1 %v1031_v36  ;;  %231 = vmatpush.msra.mxu2 %v986_v18  ;;  %v1068_v50 = vand.u32 4294901760, %v1040_v39  ;;  %v1071_v51 = vsub.f32 %v68_v34, %v1055_v45  ;;  %v1073_v52 = vand.u32 4294901760, %v66_v42  ;;  %v158_v53 = vsub.f32 %v1015_v28, %v1046_v41 }
  0x19   :  { %87 = vmatpush.msra.mxu0 %v968_v10  ;;  %283 = vmatpush.msra.mxu3 %v968_v10  ;;  %v1081_v55 = vand.u32 4294901760, %v146_v40  ;;  %v1084_v56 = vand.u32 4294901760, %v1053_v44  ;;  %v1087_v57 = vsub.f32 %v67_v35, %v1057_v46  ;;  %v1089_v58 = vand.u32 4294901760, %v65_v48 }
  0x1a   :  { %130 = vmatpush.msra.mxu1 %v1035_v37  ;;  %234 = vmatpush.msra.mxu2 %v989_v19  ;;  %v1092_v59 = vand.u32 4294901760, %v152_v47  ;;  %v164_v61 = vsub.f32 %v1040_v39, %v1068_v50  ;;  %v1100_v62 = vand.u32 4294901760, %v1071_v51  ;;  %v1103_v63 = vsub.f32 %v66_v42, %v1073_v52 }
  0x1b   :  { %89 = vmatpush.msra.mxu0 %v970_v11  ;;  %285 = vmatpush.msra.mxu3 %v970_v11  ;;  %v1105_v0 = vand.u32 4294901760, %v64_v54  ;;  %v1108_v2 = vand.u32 4294901760, %v158_v53  ;;  %v170_v6 = vsub.f32 %v1053_v44, %v1084_v56  ;;  %v1116_v7 = vand.u32 4294901760, %v1087_v57 }
  0x1c   :  { %136 = vmatpush.msra.mxu1 %v1050_v43  ;;  %237 = vmatpush.msra.mxu2 %v992_v20  ;;  %1376 = vst [vmem:[#allocation12_spill] sm:$0xff] %v1103_v63  ;;  %v1119_v8 = vsub.f32 %v65_v48, %v1089_v58  ;;  %v1121_v12 = vand.u32 4294901760, %v63_v60  ;;  %v1125_v13 = vand.u32 4294901760, %v62_v1  ;;  %v1129_v21 = vand.u32 4294901760, %v164_v61 }
  0x1d   :  { %91 = vmatpush.msra.mxu0 %v983_v17  ;;  %287 = vmatpush.msra.mxu3 %v983_v17  ;;  %v176_v29 = vsub.f32 %v1071_v51, %v1100_v62  ;;  %v1134_v30 = vand.u32 4294901760, %v1103_v63  ;;  %v1137_v31 = vsub.f32 %v64_v54, %v1105_v0  ;;  %v1143_v34 = vand.u32 4294901760, %v170_v6 }
  0x1e   :  { %142 = vmatpush.msra.mxu1 %v1065_v49  ;;  %240 = vmatpush.msra.mxu2 %v1015_v28  ;;  %1377 = vst [vmem:[#allocation13_spill] sm:$0xff] %v1119_v8  ;;  %v182_v35 = vsub.f32 %v1087_v57, %v1116_v7  ;;  %v1148_v38 = vand.u32 4294901760, %v1119_v8  ;;  %v1151_v40 = vsub.f32 %v63_v60, %v1121_v12 }
  0x1f   :  { %93 = vmatpush.msra.mxu0 %v1005_v25  ;;  %289 = vmatpush.msra.mxu3 %v1005_v25  ;;  %v1157_v42 = vand.u32 4294901760, %v176_v29  ;;  %v188_v47 = vsub.f32 %v1103_v63, %v1134_v30  ;;  %v1162_v48 = vand.u32 4294901760, %v1137_v31  ;;  %v1165_v53 = vsub.f32 %v62_v1, %v1125_v13 }
  0x20   :  { %148 = vmatpush.msra.mxu1 %v1081_v55  ;;  %243 = vmatpush.msra.mxu2 %v1040_v39  ;;  %v1171_v54 = vand.u32 4294901760, %v182_v35  ;;  %v194_v60 = vsub.f32 %v1119_v8, %v1148_v38  ;;  %v1176_v61 = vand.u32 4294901760, %v1151_v40 }
  0x21   :  { %95 = vmatpush.msra.mxu0 %v1025_v32  ;;  %291 = vmatpush.msra.mxu3 %v1025_v32  ;;  %v1182_v1 = vand.u32 4294901760, %v188_v47  ;;  %v200_v6 = vsub.f32 %v1137_v31, %v1162_v48  ;;  %v1187_v29 = vand.u32 4294901760, %v1165_v53 }
  0x22   :  { %154 = vmatpush.msra.mxu1 %v1092_v59  ;;  %246 = vmatpush.msra.mxu2 %v1053_v44  ;;  %v1193_v35 = vand.u32 4294901760, %v194_v60  ;;  %v206_v47 = vsub.f32 %v1151_v40, %v1176_v61 }
  0x23   :  { %97 = vmatpush.msra.mxu0 %v1055_v45  ;;  %293 = vmatpush.msra.mxu3 %v1055_v45 }
  0x24   :  { %160 = vmatpush.msra.mxu1 %v1108_v2  ;;  %249 = vmatpush.msra.mxu2 %v1071_v51  ;;  %v1209_v60 = vand.u32 4294901760, %v206_v47 }
  0x25   :  { %99 = vmatpush.msra.mxu0 %v1057_v46  ;;  %295 = vmatpush.msra.mxu3 %v1057_v46 }
  0x26   :  { %166 = vmatpush.msra.mxu1 %v1129_v21  ;;  %252 = vmatpush.msra.mxu2 %v1087_v57 }
  0x27   :  { %101 = vmatpush.msra.mxu0 %v1073_v52  ;;  %297 = vmatpush.msra.mxu3 %v1073_v52 }
  0x28   :  { %172 = vmatpush.msra.mxu1 %v1143_v34  ;;  %255 = vmatpush.msra.mxu2 %v1103_v63  ;;  %v212_v63 = vsub.f32 %v1165_v53, %v1187_v29 }
  0x29   :  { %103 = vmatpush.msra.mxu0 %v1089_v58  ;;  %299 = vmatpush.msra.mxu3 %v1089_v58 }
  0x2a   :  { %178 = vmatpush.msra.mxu1 %v1157_v42  ;;  %258 = vmatpush.msra.mxu2 %v1119_v8  ;;  %v1201_v8 = vand.u32 4294901760, %v200_v6  ;;  %v1215_v6 = vand.u32 4294901760, %v212_v63 }
  0x2b   :  { %105 = vmatpush.msra.mxu0 %v1105_v0  ;;  %301 = vmatpush.msra.mxu3 %v1105_v0 }
  0x2c   :  { %184 = vmatpush.msra.mxu1 %v1171_v54  ;;  %261 = vmatpush.msra.mxu2 %v1137_v31 }
  0x2d   :  { %107 = vmatpush.msra.mxu0 %v1121_v12  ;;  %303 = vmatpush.msra.mxu3 %v1121_v12 }
  0x2e   :  { %190 = vmatpush.msra.mxu1 %v1182_v1  ;;  %264 = vmatpush.msra.mxu2 %v1151_v40 }
  0x2f   :  { %109 = vmatpush.msra.mxu0 %v1125_v13  ;;  %305 = vmatpush.msra.mxu3 %v1125_v13 }
  0x30   :  { %196 = vmatpush.msra.mxu1 %v1193_v35  ;;  %267 = vmatpush.msra.mxu2 %v1165_v53 }
  0x31   :  { %316 = vmatpush.msrb.mxu0 %v997_v22  ;;  %467 = vmatpush.msrb.mxu3 %v1031_v36  ;;  %v1233_v36 = vld [vmem:[#allocation2] sm:$0xf] }
  0x32   :  { %422 = vmatpush.msrb.mxu2 %v960_v3  ;;  %202 = vmatpush.msra.mxu1 %v1201_v8  ;;  %v420_v63 = vmul.f32 %v1233_v36, %v1233_v36 }
  0x33   :  { %320 = vmatpush.msrb.mxu0 %v1000_v23  ;;  %473 = vmatpush.msrb.mxu3 %v1035_v37  ;;  %v1242_v37 = vand.u32 4294901760, %v1233_v36 }
  0x34   :  { %424 = vmatpush.msrb.mxu2 %v962_v4  ;;  %208 = vmatpush.msra.mxu1 %v1209_v60 }
  0x35   :  { %324 = vmatpush.msrb.mxu0 %v1003_v24  ;;  %479 = vmatpush.msrb.mxu3 %v1050_v43  ;;  %v111_v43 = vsub.f32 %v1233_v36, %v1242_v37 }
  0x36   :  { %426 = vmatpush.msrb.mxu2 %v964_v5  ;;  %214 = vmatpush.msra.mxu1 %v1215_v6 }
  0x37   :  { %328 = vmatpush.msrb.mxu0 %v1009_v26  ;;  %485 = vmatpush.msrb.mxu3 %v1065_v49  ;;  %v112_v49 = vand.u32 4294901760, %v111_v43 }
  0x38   :  { %383 = vmatpush.msrb.mxu1 %v960_v3  ;;  %428 = vmatpush.msrb.mxu2 %v966_v9 }
  0x39   :  { %332 = vmatpush.msrb.mxu0 %v1012_v27  ;;  %491 = vmatpush.msrb.mxu3 %v1081_v55  ;;  %v113_v55 = vsub.f32 %v111_v43, %v112_v49 }
  0x3a   :  { %385 = vmatpush.msrb.mxu1 %v962_v4  ;;  %430 = vmatpush.msrb.mxu2 %v968_v10 }
  0x3b   :  { %336 = vmatpush.msrb.mxu0 %v1029_v33  ;;  %497 = vmatpush.msrb.mxu3 %v1092_v59  ;;  %v114_v59 = vand.u32 4294901760, %v113_v55 }
  0x3c   :  { %387 = vmatpush.msrb.mxu1 %v964_v5  ;;  %432 = vmatpush.msrb.mxu2 %v970_v11 }
  0x3d   :  { %340 = vmatpush.msrb.mxu0 %v1046_v41  ;;  %503 = vmatpush.msrb.mxu3 %v1108_v2 }
  0x3e   :  { %389 = vmatpush.msrb.mxu1 %v966_v9  ;;  %434 = vmatpush.msrb.mxu2 %v983_v17 }
  0x3f   :  { %344 = vmatpush.msrb.mxu0 %v1068_v50  ;;  %509 = vmatpush.msrb.mxu3 %v1129_v21 }
  0x40   :  { %391 = vmatpush.msrb.mxu1 %v968_v10  ;;  %436 = vmatpush.msrb.mxu2 %v1005_v25 }
  0x41   :  { %348 = vmatpush.msrb.mxu0 %v1084_v56  ;;  %515 = vmatpush.msrb.mxu3 %v1143_v34 }
  0x42   :  { %393 = vmatpush.msrb.mxu1 %v970_v11  ;;  %438 = vmatpush.msrb.mxu2 %v1025_v32 }
  0x43   :  { %352 = vmatpush.msrb.mxu0 %v1100_v62  ;;  %521 = vmatpush.msrb.mxu3 %v1157_v42 }
  0x44   :  { %395 = vmatpush.msrb.mxu1 %v983_v17  ;;  %440 = vmatpush.msrb.mxu2 %v1055_v45 }
  0x45   :  { %356 = vmatpush.msrb.mxu0 %v1116_v7  ;;  %527 = vmatpush.msrb.mxu3 %v1171_v54 }
  0x46   :  { %397 = vmatpush.msrb.mxu1 %v1005_v25  ;;  %442 = vmatpush.msrb.mxu2 %v1057_v46 }
  0x47   :  { %360 = vmatpush.msrb.mxu0 %v1134_v30  ;;  %533 = vmatpush.msrb.mxu3 %v1182_v1 }
  0x48   :  { %399 = vmatpush.msrb.mxu1 %v1025_v32  ;;  %444 = vmatpush.msrb.mxu2 %v1073_v52 }
  0x49   :  { %364 = vmatpush.msrb.mxu0 %v1148_v38  ;;  %539 = vmatpush.msrb.mxu3 %v1193_v35 }
  0x4a   :  { %401 = vmatpush.msrb.mxu1 %v1055_v45  ;;  %446 = vmatpush.msrb.mxu2 %v1089_v58 }
  0x4b   :  { %368 = vmatpush.msrb.mxu0 %v1162_v48  ;;  %545 = vmatpush.msrb.mxu3 %v1201_v8 }
  0x4c   :  { %403 = vmatpush.msrb.mxu1 %v1057_v46  ;;  %448 = vmatpush.msrb.mxu2 %v1105_v0 }
  0x4d   :  { %372 = vmatpush.msrb.mxu0 %v1176_v61  ;;  %551 = vmatpush.msrb.mxu3 %v1209_v60 }
  0x4e   :  { %405 = vmatpush.msrb.mxu1 %v1073_v52  ;;  %450 = vmatpush.msrb.mxu2 %v1121_v12 }
  0x4f   :  { %270 = vmatmul.f32.vlgmr.msra.gmra.mxu2 %v111_v43  ;;  %376 = vmatpush.msrb.mxu0 %v1187_v29 }
  0x50   :  { %407 = vmatpush.msrb.mxu1 %v1089_v58  ;;  %452 = vmatpush.msrb.mxu2 %v1125_v13 }
  0x51   :  { %115 = vmatmul.f32.vlgmr.msra.gmra.mxu0 %v114_v59  ;;  %309 = vmatmul.f32.vlgmr.msra.gmra.mxu3 %v112_v49 }
  0x52   :  { %409 = vmatpush.msrb.mxu1 %v1105_v0  ;;  %565 = vmatpush.msra.mxu0 %v974_v14  ;;  %v1299_v14 = vand.u32 4294901760, %v420_v63 }
  0x53   :  { %659 = vmatpush.msra.mxu2 %v997_v22  ;;  %557 = vmatpush.msrb.mxu3 %v1215_v6 }
  0x54   :  { %411 = vmatpush.msrb.mxu1 %v1121_v12  ;;  %568 = vmatpush.msra.mxu0 %v977_v15 }
  0x55   :  { %216 = vmatmul.f32.vlgmr.msra.gmra.mxu1 %v1242_v37  ;;  %663 = vmatpush.msra.mxu2 %v1000_v23 }
  0x56   :  { %726 = vmatpush.msra.mxu3 %v960_v3  ;;  %413 = vmatpush.msrb.mxu1 %v1125_v13 }
  0x57   :  { %571 = vmatpush.msra.mxu0 %v981_v16  ;;  %667 = vmatpush.msra.mxu2 %v1003_v24 }
  0x58   :  { %618 = vmatpush.msra.mxu1 %v960_v3  ;;  %728 = vmatpush.msra.mxu3 %v962_v4  ;;  %v454_v3 = vsub.f32 %v420_v63, %v1299_v14 }
  0x59   :  { %574 = vmatpush.msra.mxu0 %v986_v18  ;;  %671 = vmatpush.msra.mxu2 %v1009_v26 }
  0x5a   :  { %620 = vmatpush.msra.mxu1 %v962_v4  ;;  %730 = vmatpush.msra.mxu3 %v964_v5  ;;  %v455_v4 = vand.u32 4294901760, %v454_v3 }
  0x5b   :  { %378 = vmatmul.f32.vlgmr.msrb.gmra.mxu0 %v1242_v37  ;;  %675 = vmatpush.msra.mxu2 %v1012_v27 }
  0x5c   :  { %622 = vmatpush.msra.mxu1 %v964_v5  ;;  %577 = vmatpush.msra.mxu0 %v989_v19  ;;  %v456_v5 = vsub.f32 %v454_v3, %v455_v4 }
  0x5d   :  { %732 = vmatpush.msra.mxu3 %v966_v9  ;;  %415 = vmatmul.f32.vlgmr.msrb.gmra.mxu1 %v1242_v37 }
  0x5e   :  { %580 = vmatpush.msra.mxu0 %v992_v20  ;;  %624 = vmatpush.msra.mxu1 %v966_v9  ;;  %v457_v9 = vand.u32 4294901760, %v456_v5 }
  0x5f   :  { %679 = vmatpush.msra.mxu2 %v1029_v33  ;;  %734 = vmatpush.msra.mxu3 %v968_v10 }
  0x60   :  { %583 = vmatpush.msra.mxu0 %v1015_v28  ;;  %626 = vmatpush.msra.mxu1 %v968_v10  ;;  %v1378_v10 = vld [vmem:[#allocation12_spill] sm:$0xff] }
  0x61   :  { %683 = vmatpush.msra.mxu2 %v1046_v41  ;;  %736 = vmatpush.msra.mxu3 %v970_v11 }
  0x62   :  { %586 = vmatpush.msra.mxu0 %v1040_v39  ;;  %628 = vmatpush.msra.mxu1 %v970_v11  ;;  %v1379_v11 = vld [vmem:[#allocation13_spill] sm:$0xff] }
  0x63   :  { %687 = vmatpush.msra.mxu2 %v1068_v50  ;;  %738 = vmatpush.msra.mxu3 %v983_v17 }
  0x64   :  { %589 = vmatpush.msra.mxu0 %v1053_v44  ;;  %630 = vmatpush.msra.mxu1 %v983_v17 }
  0x65   :  { %691 = vmatpush.msra.mxu2 %v1084_v56  ;;  %740 = vmatpush.msra.mxu3 %v1005_v25 }
  0x66   :  { %592 = vmatpush.msra.mxu0 %v1071_v51  ;;  %632 = vmatpush.msra.mxu1 %v1005_v25 }
  0x67   :  { %695 = vmatpush.msra.mxu2 %v1100_v62  ;;  %742 = vmatpush.msra.mxu3 %v1025_v32 }
  0x68   :  { %595 = vmatpush.msra.mxu0 %v1087_v57  ;;  %634 = vmatpush.msra.mxu1 %v1025_v32 }
  0x69   :  { %699 = vmatpush.msra.mxu2 %v1116_v7  ;;  %744 = vmatpush.msra.mxu3 %v1055_v45 }
  0x6a   :  { %598 = vmatpush.msra.mxu0 %v1378_v10  ;;  %636 = vmatpush.msra.mxu1 %v1055_v45 }
  0x6b   :  { %703 = vmatpush.msra.mxu2 %v1134_v30  ;;  %746 = vmatpush.msra.mxu3 %v1057_v46 }
  0x6c   :  { %458 = vmatmul.f32.vlgmr.msrb.gmra.mxu2 %v457_v9  ;;  %559 = vmatmul.f32.vlgmr.msrb.gmra.mxu3 %v1299_v14 }
  0x6d   :  { %601 = vmatpush.msra.mxu0 %v1379_v11  ;;  %638 = vmatpush.msra.mxu1 %v1057_v46 }
  0x6e   :  { %707 = vmatpush.msra.mxu2 %v1148_v38  ;;  %748 = vmatpush.msra.mxu3 %v1073_v52 }
  0x6f   :  { %604 = vmatpush.msra.mxu0 %v1137_v31  ;;  %640 = vmatpush.msra.mxu1 %v1073_v52  ;;  %v814_v31 = vld [vmem:[#allocation5] ss:$0 sm:$0xff] }
  0x70   :  { %711 = vmatpush.msra.mxu2 %v1162_v48  ;;  %750 = vmatpush.msra.mxu3 %v1089_v58 }
  0x71   :  { %607 = vmatpush.msra.mxu0 %v1151_v40  ;;  %642 = vmatpush.msra.mxu1 %v1089_v58  ;;  %v815_v40 = vld [vmem:[%s1371_s2] ss:$0 sm:$0xff] }
  0x72   :  { %715 = vmatpush.msra.mxu2 %v1176_v61  ;;  %752 = vmatpush.msra.mxu3 %v1105_v0 }
  0x73   :  { %610 = vmatpush.msra.mxu0 %v1165_v53  ;;  %644 = vmatpush.msra.mxu1 %v1105_v0 }
  0x74   :  { %719 = vmatpush.msra.mxu2 %v1187_v29  ;;  %754 = vmatpush.msra.mxu3 %v1121_v12 }
  0x75   :  { %613 = vmatmul.f32.vlgmr.msra.gmra.mxu0 %v454_v3  ;;  %721 = vmatmul.f32.vlgmr.msra.gmra.mxu2 %v1299_v14 }
  0x76   :  { %646 = vmatpush.msra.mxu1 %v1121_v12  ;;  %756 = vmatpush.msra.mxu3 %v1125_v13 }
  0x77   :  { %758 = vmatmul.f32.vlgmr.msra.gmra.mxu3 %v1299_v14 }
  0x78   :  { %648 = vmatpush.msra.mxu1 %v1125_v13 }
  0x79   :  { %652 = vmatmul.f32.vlgmr.msra.gmra.mxu1 %v455_v4 }
  0xce   :  { %v116_v15 = vpop.f32.mrf.mxu0 }
  0xd2   :  { %v217_v16 = vpop.f32.mrf.mxu1  ;;  %v271_v18 = vpop.f32.mrf.mxu2 }
  0xd3   :  { %v218_v17 = vadd.f32 %v217_v16, %v116_v15 }
  0xd4   :  { %v310_v19 = vpop.f32.mrf.mxu3 }
  0xd5   :  { %v272_v20 = vadd.f32 %v271_v18, %v218_v17 }
  0xd7   :  { %v311_v23 = vadd.f32 %v310_v19, %v272_v20 }
  0xd8   :  { %v379_v22 = vpop.f32.mrf.mxu0 }
  0xd9   :  { %v380_v27 = vadd.f32 %v379_v22, %v311_v23 }
  0xda   :  { %v416_v24 = vpop.f32.mrf.mxu1 }
  0xdb   :  { %v417_v33 = vadd.f32 %v416_v24, %v380_v27 }
  0xdd   :  { %v419_v46 = vmul.f32 0.03125, %v417_v33 }
  0xdf   :  { %v763_v56 = vmul.f32 %v419_v46, %v419_v46  ;;  %v779_v30 = vsub.f32 %v1233_v36, %v419_v46 }
  0xef   :  { %v459_v25 = vpop.f32.mrf.mxu2  ;;  %v560_v26 = vpop.f32.mrf.mxu3 }
  0xf0   :  { %v561_v28 = vadd.f32 %v560_v26, %v459_v25 }
  0xf2   :  { %v614_v32 = vpop.f32.mrf.mxu0 }
  0xf3   :  { %v615_v39 = vadd.f32 %v614_v32, %v561_v28 }
  0xf6   :  { %v653_v41 = vpop.f32.mrf.mxu1 }
  0xf7   :  { %v654_v44 = vadd.f32 %v653_v41, %v615_v39 }
  0xf8   :  { %v722_v45 = vpop.f32.mrf.mxu2 }
  0xf9   :  { %v723_v50 = vadd.f32 %v722_v45, %v654_v44 }
  0xfa   :  { %v759_v51 = vpop.f32.mrf.mxu3 }
  0xfb   :  { %v760_v52 = vadd.f32 %v759_v51, %v723_v50 }
  0xfd   :  { %v762_v57 = vmul.f32 0.03125, %v760_v52 }
  0xff   :  { %v764_v58 = vsub.f32 %v762_v57, %v763_v56 }
 0x101   :  { %v765_v62 = vmax.f32 %v764_v58, 0.0 }
 0x103   :  { %v766_v0 = vadd.f32 1e-12, %v765_v62 }
 0x105   :  { %816 = vrsqrt.f32 %v766_v0  ;;  %vm773_vm1 = vweird.f32 %v766_v0 }
 0x10b   :  { %v817_v2 = vpop.eup %816 }
 0x10c   :  { %v768_v7 = vmul.f32 %v817_v2, %v766_v0  ;;  %vm774_vm0 = vweird.f32 %v817_v2 }
 0x10d   :  { %vm775_vm2 = vmor %vm773_vm1, %vm774_vm0 }
 0x10e   :  { %v769_v8 = vmul.f32 %v817_v2, %v768_v7 }
 0x110   :  { %v770_v12 = vmul.f32 0.5, %v769_v8 }
 0x112   :  { %v771_v13 = vsub.f32 1.5, %v770_v12 }
 0x114   :  { %v772_v21 = vmul.f32 %v817_v2, %v771_v13 }
 0x116   :  { %v776_v34 = vsel %vm775_vm2, %v817_v2, %v772_v21 }
 0x117   :  { %v780_v38 = vmul.f32 %v779_v30, %v776_v34 }
 0x119   :  { %v784_v42 = vmul.f32 %v814_v31, %v780_v38 }
 0x11b   :  { %v788_v48 = vadd.f32 %v815_v40, %v784_v42 }
 0x11d   :  { %789 = vst [vmem:[#allocation8] sm:$0xf] %v788_v48 }
 0x11e   :  { %800 = dma.vmem_to_hbm [thread:$0]  %s796_s6, 64, %s798_s9, [#allocation4]  }
 0x11f   :  { %918 = dma.done.wait [#allocation4], 64  }
 0x120   :  { %919 = vsyncadd [#allocation4], 4294967232 }
 0x121   :  { %805 = vsyncpa [#allocation3], 1 }
 0x122   :  { %806 = vsyncpa [#allocation6], 1 }
 0x123   :  { %807 = vsyncpa [#allocation4], 1 }

</bundles_post_ra>
